<compile_context>
chip_gen: v7x
topology: tpu7x:2x2x1
jax: 0.10.0
libtpu: 0.0.40
codegen_flags: <defaults>
</compile_context>

<pallas_src>
import functools
import math

import jax
import jax.numpy as jnp
from jax.experimental import pallas as pl
from jax.experimental.pallas import tpu as pltpu


# -----------------------------------------------------------------------------
# Kernels
# -----------------------------------------------------------------------------

def _gem_lse_kernel(p_ref, x_ref, o_ref, *, eps, log_hw):
    """Single-pass GeM, traced exponent p (exact log-sum-exp formulation)."""
    # p_ref : SMEM (1,) f32 (scalar prefetch)
    # x_ref : VMEM (tile_r, hw)
    # o_ref : VMEM (1, tile_r) lane-dense output row
    p = p_ref[0]
    inv_p = 1.0 / p                                # same p == 0 failure mode as PyTorch
    x = x_ref[...].astype(jnp.float32)
    l = p * jnp.log(jnp.maximum(x, eps))           # p * log(clamp(x, eps)), finite
    m = jnp.max(l, axis=-1, keepdims=True)         # (tile_r, 1)
    s = jnp.sum(jnp.exp(l - m), axis=-1, keepdims=True)
    # log(mean(x^p)) = m + log(s) - log(H*W);  y = exp(log-mean / p).  Exact,
    # no underflow guard needed (s >= 1, m finite).
    y = jnp.exp((m + jnp.log(s) - log_hw) * inv_p)
    o_ref[...] = y.reshape(1, -1).astype(o_ref.dtype)


def _gem_intp_kernel(x_ref, o_ref, *, eps, p_int, inv_p, inv_hw):
    """Single-pass GeM, frozen small-integer exponent (VPU multiply chain)."""
    x = x_ref[...].astype(jnp.float32)
    xc = jnp.maximum(x, eps)
    xp = xc
    for _ in range(p_int - 1):                     # compile-time unrolled
        xp = xp * xc
    mean = jnp.sum(xp, axis=-1, keepdims=True) * inv_hw
    if p_int == 1:
        y = mean
    else:
        y = jnp.exp(jnp.log(mean) * inv_p)         # mean >= eps**p > 0 (p <= 4)
    o_ref[...] = y.reshape(1, -1).astype(o_ref.dtype)


def _gem_lse_split_kernel(p_ref, x_ref, o_ref, m_ref, s_ref, *,
                          eps, log_hw, hw, hw_block):
    """Spatial-split GeM (huge H*W): online log-sum-exp over hw blocks."""
    j = pl.program_id(1)

    @pl.when(j == 0)
    def _():
        m_ref[...] = jnp.full_like(m_ref, -jnp.inf)
        s_ref[...] = jnp.zeros_like(s_ref)

    p = p_ref[0]
    x = x_ref[...].astype(jnp.float32)
    l = p * jnp.log(jnp.maximum(x, eps))
    if hw % hw_block != 0:                         # mask the ragged last hw block
        col = j * hw_block + jax.lax.broadcasted_iota(jnp.int32, l.shape, 1)
        l = jnp.where(col < hw, l, -jnp.inf)
    m_blk = jnp.max(l, axis=-1, keepdims=True)
    m_new = jnp.maximum(m_ref[...], m_blk)
    s_ref[...] = (s_ref[...] * jnp.exp(m_ref[...] - m_new)
                  + jnp.sum(jnp.exp(l - m_new), axis=-1, keepdims=True))
    m_ref[...] = m_new

    @pl.when(j == pl.num_programs(1) - 1)
    def _():
        inv_p = 1.0 / p
        y = jnp.exp((m_ref[...] + jnp.log(s_ref[...]) - log_hw) * inv_p)
        o_ref[...] = y.reshape(1, -1).astype(o_ref.dtype)


# -----------------------------------------------------------------------------
# Wrapper
# -----------------------------------------------------------------------------

def _cdiv(a, b):
    return (a + b - 1) // b


def _round_up(n, m):
    return ((n + m - 1) // m) * m


def _budgets():
    """(double-buffered input byte budget, vmem_limit_bytes) per generation."""
    vmem_cap = None
    try:
        vmem_cap = getattr(pltpu.get_tpu_info(), "vmem_capacity_bytes", None)
    except Exception:
        vmem_cap = None
    if vmem_cap is not None and vmem_cap > 96 * 1024 * 1024:
        # v5e / v6e: 128 MiB VMEM per TensorCore -> use it.
        return 48 * 1024 * 1024, 96 * 1024 * 1024
    # v7x-class (64 MiB per TC) or unknown: stay conservative.
    return 20 * 1024 * 1024, 40 * 1024 * 1024


def gem_forward(x, p, eps=1e-6, *, hw_block=None):
    """GeM pooling.

    x : (B, C, H, W).  p : Python scalar (frozen) or shape-(1,) array
    (learnable, matches nn.Parameter).  Returns (B, C) in x.dtype.
    hw_block forces the spatial-split path (auto-selected only for huge H*W).
    """
    B, C, H, W = x.shape
    rows, hw = B * C, H * W
    x2 = x.reshape(rows, hw)                       # zero-copy flatten of NCHW
    itemsize = x2.dtype.itemsize
    sub = max(8, 32 // itemsize)                   # sublane multiple: f32 8 / bf16 16 / int8 32

    in_budget, vmem_limit = _budgets()
    row_bytes = hw * itemsize
    need_split = (hw_block is not None) or (2 * sub * row_bytes > in_budget)

    # ---- exponent handling ---------------------------------------------------
    # Frozen small-integer p -> VPU multiply chain; everything else -> traced p.
    p_static = None
    if isinstance(p, (int, float)):
        pf = float(p)
        if pf.is_integer() and 1 <= int(pf) <= 4 and (eps ** pf) > 1e-35:
            p_static = int(pf)
        else:
            p = jnp.full((1,), pf, jnp.float32)
    p_arr = None
    if p_static is None or need_split:
        p_arr = jnp.asarray(
            float(p_static) if p_static is not None else p, jnp.float32
        ).reshape(1)

    # ---- tile sizing (byte-budget based, no padding pass) ---------------------
    if need_split:
        # Minimum sublane row tile; hw blocks sized to the budget (mult. of 128).
        tile_r = rows if rows <= sub else sub
        if hw_block is None:
            hw_block = max(128, (in_budget // (2 * tile_r * itemsize)) // 128 * 128)
            hw_block = min(hw_block, max(128, (hw // 128) * 128))
        hw_block = min(hw_block, hw)
        num_tiles = _cdiv(rows, tile_r)
        num_hw = _cdiv(hw, hw_block)
    else:
        max_tile_r = max(sub, (in_budget // (2 * row_bytes)) // sub * sub)
        if rows <= sub:
            tile_r = rows                          # full first dim, no alignment needed
        else:
            # >= 2 tiles: pipeline overlap + both v7x TensorCores get work.
            tile_r = max(sub, min(max_tile_r, _round_up(_cdiv(rows, 2), sub)))
        num_tiles = _cdiv(rows, tile_r)

    # ---- compiler hints --------------------------------------------------------
    trans_per_elem = 0 if (p_static is not None and not need_split) else 2
    cost = pl.CostEstimate(
        flops=(3 + (p_static or 0)) * rows * hw,
        transcendentals=trans_per_elem * rows * hw + 2 * rows,
        bytes_accessed=rows * hw * itemsize + rows * 4 + 4,
    )
    compiler_params = pltpu.CompilerParams(
        dimension_semantics=("parallel", "arbitrary") if need_split else ("parallel",),
        vmem_limit_bytes=vmem_limit,
    )
    out_shape = jax.ShapeDtypeStruct((num_tiles, tile_r), jnp.float32)

    if need_split:
        kernel = functools.partial(
            _gem_lse_split_kernel, eps=float(eps), log_hw=math.log(hw),
            hw=hw, hw_block=hw_block)
        out = pl.pallas_call(
            kernel,
            out_shape=out_shape,
            grid_spec=pltpu.PrefetchScalarGridSpec(
                num_scalar_prefetch=1,                         # p -> SMEM
                grid=(num_tiles, num_hw),
                in_specs=[pl.BlockSpec((tile_r, hw_block),
                                       lambda i, j, p_ref: (i, j))],
                out_specs=pl.BlockSpec((1, tile_r),
                                       lambda i, j, p_ref: (i, 0)),
                scratch_shapes=[pltpu.VMEM((tile_r, 1), jnp.float32),   # running max
                                pltpu.VMEM((tile_r, 1), jnp.float32)],  # running sum
            ),
            compiler_params=compiler_params,
            cost_estimate=cost,
        )(p_arr, x2)
    elif p_static is not None:
        kernel = functools.partial(
            _gem_intp_kernel, eps=float(eps), p_int=p_static,
            inv_p=1.0 / p_static, inv_hw=1.0 / hw)
        out = pl.pallas_call(
            kernel,
            out_shape=out_shape,
            grid_spec=pltpu.PrefetchScalarGridSpec(
                num_scalar_prefetch=0,
                grid=(num_tiles,),
                in_specs=[pl.BlockSpec((tile_r, hw), lambda i: (i, 0))],
                out_specs=pl.BlockSpec((1, tile_r), lambda i: (i, 0)),
            ),
            compiler_params=compiler_params,
            cost_estimate=cost,
        )(x2)
    else:
        kernel = functools.partial(
            _gem_lse_kernel, eps=float(eps), log_hw=math.log(hw))
        out = pl.pallas_call(
            kernel,
            out_shape=out_shape,
            grid_spec=pltpu.PrefetchScalarGridSpec(
                num_scalar_prefetch=1,                         # p -> SMEM
                grid=(num_tiles,),
                in_specs=[pl.BlockSpec((tile_r, hw), lambda i, p_ref: (i, 0))],
                out_specs=pl.BlockSpec((1, tile_r), lambda i, p_ref: (i, 0)),
            ),
            compiler_params=compiler_params,
            cost_estimate=cost,
        )(p_arr, x2)

    # Ragged last block rows (if any) are garbage; slice them off here.
    y = out.reshape(-1)[:rows].astype(x.dtype)
    return y.reshape(B, C)


# -----------------------------------------------------------------------------
# Self-test
# -----------------------------------------------------------------------------

if __name__ == "__main__":
    key = jax.random.PRNGKey(0)
    B, C, H, W = 2, 4, 16, 16
    x = jax.random.normal(key, (B, C, H, W), dtype=jnp.float32)
    eps = 1e-6
    # Matches nn.Parameter(torch.ones(1) * 3)
    p_param = jnp.ones((1,), dtype=jnp.float32) * 3.0

    def ref(xv, pv):
        xc = jnp.maximum(xv, eps)                  # clamp(min=eps)
        return jnp.mean(xc ** pv, axis=(-2, -1)) ** (1.0 / pv)

    r = ref(x, p_param[0])

    # 1) Learnable (traced) p -- matches the nn.Module forward exactly.
    y = gem_forward(x, p_param, eps)
    jax.block_until_ready(y)
    assert y.shape == (B, C)
    assert jnp.allclose(y, r, rtol=1e-4, atol=1e-5), (y, r)

    # 2) Frozen/static p fast path (integer multiply chain, no EUP pow).
    y2 = gem_forward(x, 3.0, eps)
    jax.block_until_ready(y2)
    assert jnp.allclose(y2, r, rtol=1e-4, atol=1e-5), (y2, r)

    # 3) Spatial-split fallback (forced small hw block), used for huge H*W.
    y3 = gem_forward(x, p_param, eps, hw_block=128)
    jax.block_until_ready(y3)
    assert jnp.allclose(y3, r, rtol=1e-4, atol=1e-5), (y3, r)

    print("KERNEL_OK")
</pallas_src>

<mosaic_0001>
module attributes {stable_mosaic.version = 11 : i64} {
  func.func @_gem_lse_kernel(%arg0: i32, %arg1: memref<1xf32, #tpu.memory_space<smem>>, %arg2: memref<8x256xf32, #tpu.memory_space<vmem>>, %arg3: memref<1x8xf32, #tpu.memory_space<vmem>>) attributes {dimension_semantics = [#tpu.dimension_semantics<parallel>], iteration_bounds = array<i64: 1>, scalar_prefetch = 1 : i64, scratch_operands = 0 : i64, tpu.core_type = #tpu.core_type<tc>, window_params = [{transform_indices = @transform_0, window_bounds = array<i64: 8, 256>}, {transform_indices = @transform_1, window_bounds = array<i64: 1, 8>}]} {
    %c0 = arith.constant 0 : index
    %0 = memref.load %arg1[%c0] : memref<1xf32, #tpu.memory_space<smem>>
    %cst = arith.constant 1.000000e+00 : f32
    %1 = arith.divf %cst, %0 : f32
    %c0_0 = arith.constant 0 : index
    %c0_1 = arith.constant 0 : index
    %2 = vector.load %arg2[%c0_0, %c0_1] : memref<8x256xf32, #tpu.memory_space<vmem>>, vector<8x256xf32>
    %cst_2 = arith.constant 9.99999997E-7 : f32
    %3 = vector.broadcast %cst_2 : f32 to vector<8x256xf32>
    %4 = arith.maximumf %2, %3 : vector<8x256xf32>
    %5 = math.log %4 : vector<8x256xf32>
    %6 = vector.broadcast %0 : f32 to vector<8x256xf32>
    %7 = arith.mulf %6, %5 : vector<8x256xf32>
    %cst_3 = arith.constant dense<0xFF800000> : vector<8xf32>
    %8 = vector.multi_reduction <maximumf>, %7, %cst_3 [1] : vector<8x256xf32> to vector<8xf32>
    %9 = vector.shape_cast %8 : vector<8xf32> to vector<8x1xf32>
    %10 = vector.broadcast %9 : vector<8x1xf32> to vector<8x256xf32>
    %11 = arith.subf %7, %10 : vector<8x256xf32>
    %12 = math.exp %11 : vector<8x256xf32>
    %cst_4 = arith.constant dense<0.000000e+00> : vector<8xf32>
    %13 = vector.multi_reduction <add>, %12, %cst_4 [1] : vector<8x256xf32> to vector<8xf32>
    %14 = vector.shape_cast %13 : vector<8xf32> to vector<8x1xf32>
    %15 = math.log %14 : vector<8x1xf32>
    %16 = arith.addf %9, %15 : vector<8x1xf32>
    %cst_5 = arith.constant 5.54517746 : f32
    %17 = vector.broadcast %cst_5 : f32 to vector<8x1xf32>
    %18 = arith.subf %16, %17 : vector<8x1xf32>
    %19 = vector.broadcast %1 : f32 to vector<8x1xf32>
    %20 = arith.mulf %18, %19 : vector<8x1xf32>
    %21 = math.exp %20 : vector<8x1xf32>
    %22 = vector.shape_cast %21 : vector<8x1xf32> to vector<1x8xf32>
    %c0_6 = arith.constant 0 : index
    %c0_7 = arith.constant 0 : index
    %23 = vector.load %arg3[%c0_6, %c0_7] : memref<1x8xf32, #tpu.memory_space<vmem>>, vector<1x8xf32>
    tpu.vector_store %arg3[%c0_6, %c0_7], %22 {strides = array<i32>} : memref<1x8xf32, #tpu.memory_space<vmem>>, vector<1x8xf32>,
    return
  }
  func.func @transform_0(%arg0: i32, %arg1: memref<1xf32, #tpu.memory_space<smem>>) -> (i32, i32) {
    %c0_i32 = arith.constant 0 : i32
    %c0_i32_0 = arith.constant 0 : i32
    return %arg0, %c0_i32 : i32, i32
  }
  func.func @transform_1(%arg0: i32, %arg1: memref<1xf32, #tpu.memory_space<smem>>) -> (i32, i32) {
    %c0_i32 = arith.constant 0 : i32
    %c0_i32_0 = arith.constant 0 : i32
    return %arg0, %c0_i32 : i32, i32
  }
}

</mosaic_0001>

<bundles_post_ra>
// kernel: tpu_custom_call.1
= control target key start
LH: loop header
LB: loop body
LE: loop exit
PB: predicated region body
PF: predicated region fallthrough
CT: control target
= control target key end

     0   :  { %8 = vsyncpa [#allocation5], 0  ;;  %s194_s0 = inlined_call_operand.<no memory space> [shape: f32[1], index: 0, kind: input, shape index: {}]   ;;  %s195_s1 = inlined_call_operand.hbm [shape: f32[8,256], index: 1, kind: input, shape index: {}]   ;;  %s196_s2 = inlined_call_operand.hbm [shape: f32[1,8], index: 2, kind: output, shape index: {}]  }
   0x1   :  { %9 = vsyncpa [#allocation6], 0  ;;  %s150_s9 = smov [#allocation4]   ;;  %s102_s13 = scalar_lea.hbm %s195_s1, 256 }
   0x2   :  { %s16_s10 = sshll.u32 %s150_s9, 4  ;;  %p103_p0 = scmp.ne.s32.totalorder %s195_s1, %s102_s13  ;;  %s17_s10 = int_to_ptr.vmem [resolvable:$true] %s16_s10 }
   0x3   :  { %p106_p1 = scmp.lt.u32.totalorder %s102_s13, %s195_s1 }
   0x5   :  { %p108_p2 = pnand %p106_p1, %p103_p0 }
   0x7   :  { %111 = shalt.err (!%p108_p2)
}
   0x8   :  { %s112_s18 = scalar_lea.vmem %s17_s10, 256  ;;  %p117_p4 = scmp.lt.s32.totalorder %s17_s10, %s17_s10 }
   0x9   :  { %p113_p3 = scmp.ne.s32.totalorder %s17_s10, %s112_s18  ;;  %p118_p5 = scmp.lt.s32.totalorder %s112_s18, %s112_s18 }
   0xb   :  { %p119_p6 = por %p118_p5, %p117_p4 }
   0xd   :  { %p120_p7 = pnand %p119_p6, %p113_p3 }
   0xf   :  { %123 = shalt.err (!%p120_p7)
}
  0x10   :  { %19 = dma.hbm_to_vmem [thread:$0]  %s195_s1, 256, %s17_s10, [#allocation5]  }
  0x11   :  { %146 = dma.done.wait [#allocation5], 256  }
  0x12   :  { %147 = vsyncadd [#allocation5], 4294967040  ;;  %v27_v0 = vld [vmem:[#allocation4] sm:$0xff]  ;;  %v28_v1 = vld [vmem:[#allocation4 + $0x8] sm:$0xff]  ;;  %v24_v5 = vstv %s194_s0  ;;  %v59_v29 = vlaneseq  ;;  %s151_s1 = smov [#allocation7]   ;;  %vm66_vm0 = vcmask 57344  }
  0x13   :  { %v29_v2 = vmax.f32 %v27_v0, 1e-06  ;;  %v30_v3 = vmax.f32 %v28_v1, 1e-06  ;;  %s74_s23 = sshll.u32 %s151_s1, 4  ;;  %s75_s23 = int_to_ptr.vmem [resolvable:$true] %s74_s23 }
  0x14   :  { %v60_v30 = vand.u32 127, %v59_v29  ;;  %v62_v31 = vshrl.u32 %v59_v29, 7  ;;  %s124_s24 = scalar_lea.vmem %s75_s23, 16  ;;  %s128_s25 = scalar_lea.vmem %s75_s23, 32 }
  0x15   :  { %88 = vlog2.f32 %v29_v2  ;;  %p125_p8 = scmp.ne.s32.totalorder %s75_s23, %s124_s24  ;;  %p129_p9 = scmp.lt.s32.totalorder %s75_s23, %s75_s23 }
  0x16   :  { %90 = vlog2.f32 %v30_v3  ;;  %v63_v32 = vsub.s32 %v60_v30, %v62_v31  ;;  %p130_p10 = scmp.lt.s32.totalorder %s128_s25, %s124_s24 }
  0x17   :  { %92 = vrcp.f32 %v24_v5 }
  0x18   :  { %p131_p11 = por %p130_p10, %p129_p9 }
  0x1a   :  { %p132_p12 = pnand %p131_p11, %p125_p8 }
  0x1f   :  { %v89_v4 = vpop.eup %88 }
  0x20   :  { %v91_v6 = vpop.eup %90  ;;  %v32_v7 = vmul.f32 0.6931472, %v89_v4 }
  0x21   :  { %v34_v8 = vmul.f32 0.6931472, %v91_v6  ;;  %v93_v12 = vpop.eup %92 }
  0x22   :  { %v36_v9 = vmul.f32 %v32_v7, %v24_v5  ;;  %84 = vpush %v93_v12 }
  0x23   :  { %v37_v10 = vmul.f32 %v34_v8, %v24_v5 }
  0x25   :  { %v38_v11 = vmax.f32 %v36_v9, %v37_v10 }
  0x27   :  { %39 = vmax.xlane.f32.xlu0 %v38_v11 }
  0x53   :  { %s85_s0 = spop %84 }
  0x54   :  { %v54_v25 = vstv %s85_s0 }
  0xb4   :  { %v40_v13 = vpop.xlane.xlu0 %39 }
  0xb5   :  { %v41_v14 = vsub.f32 %v36_v9, %v40_v13  ;;  %v42_v15 = vsub.f32 %v37_v10, %v40_v13 }
  0xb7   :  { %v43_v16 = vmul.f32 1.442695, %v41_v14  ;;  %v45_v17 = vmul.f32 1.442695, %v42_v15 }
  0xb9   :  { %94 = vpow2.f32 %v43_v16 }
  0xba   :  { %96 = vpow2.f32 %v45_v17 }
  0xc3   :  { %v95_v18 = vpop.eup %94 }
  0xc4   :  { %v97_v19 = vpop.eup %96 }
  0xc5   :  { %v47_v20 = vadd.f32 %v97_v19, %v95_v18 }
  0xc7   :  { %48 = vadd.xlane.f32.xlu0 %v47_v20 }
 0x154   :  { %v49_v21 = vpop.xlane.xlu0 %48 }
 0x155   :  { %98 = vlog2.f32 %v49_v21 }
 0x15f   :  { %v99_v22 = vpop.eup %98 }
 0x160   :  { %v51_v23 = vmul.f32 0.6931472, %v99_v22 }
 0x162   :  { %v52_v24 = vadd.f32 %v51_v23, %v40_v13 }
 0x164   :  { %v83_v26 = vadd.f32 -5.5451775, %v52_v24 }
 0x166   :  { %v55_v27 = vmul.f32 %v83_v26, %v54_v25 }
 0x168   :  { %v56_v28 = vmul.f32 1.442695, %v55_v27 }
 0x16a   :  { %100 = vpow2.f32 %v56_v28 }
 0x174   :  { %v101_v33 = vpop.eup %100 }
 0x175   :  { %v64_v34 = vrot.slane %v101_v33, %v63_v32 }
 0x177   :  { %67 = vst.msk [vmem:[#allocation7] sm:$0x1] %vm66_vm0, %v64_v34 }
 0x178   :  { %135 = shalt.err (!%p132_p12)
}
 0x179   :  { %s136_s28 = scalar_lea.hbm %s196_s2, 16 }
 0x17a   :  { %p137_p13 = scmp.ne.s32.totalorder %s196_s2, %s136_s28  ;;  %p140_p0 = scmp.lt.u32.totalorder %s136_s28, %s196_s2 }
 0x17c   :  { %p142_p1 = pnand %p140_p0, %p137_p13 }
 0x17e   :  { %145 = shalt.err (!%p142_p1)
}
 0x17f   :  { %77 = dma.vmem_to_hbm [thread:$0]  %s75_s23, 16, %s196_s2, [#allocation6]  }
 0x180   :  { %148 = dma.done.wait [#allocation6], 16  }
 0x181   :  { %149 = vsyncadd [#allocation6], 4294967280 }
 0x182   :  { %81 = vsyncpa [#allocation5], 1 }
 0x183   :  { %82 = vsyncpa [#allocation6], 1 }

</bundles_post_ra>
